<compile_context>
chip_gen: v7x
topology: tpu7x:2x2x1
jax: 0.10.0
libtpu: 0.0.40
codegen_flags: <defaults>
</compile_context>

<pallas_src>
import functools

import jax
import jax.numpy as jnp
from jax.experimental import pallas as pl
from jax.experimental.pallas import tpu as pltpu


def _fft_mlp_kernel(x_ref, w1_ref, w2_ref, o_ref):
    """Fused 1x1-conv MLP on one (image-group, pixel-tile) block.

    Layout: packed channels (2C = [real; imag]) on sublanes, pixels on lanes.
      x_ref  : (bn, 2C, tp)   packed spectrum tile
      w1_ref : (2C, 2C)       conv1 weight (out, in)
      w2_ref : (2C, 2C)       conv2 weight (out, in)
      o_ref  : (bn, 2C, tp)   packed output spectrum tile
    """
    w1 = w1_ref[...]
    w2 = w2_ref[...]
    # bn is 1 for production-size images; only the tiny-bench path collapses
    # the batch into one grid step (bn == N, short static loop).
    for i in range(x_ref.shape[0]):
        h = jnp.maximum(
            jnp.dot(w1, x_ref[i], preferred_element_type=jnp.float32), 0.0)
        o_ref[i] = jnp.dot(w2, h,
                           preferred_element_type=jnp.float32).astype(o_ref.dtype)


# VMEM budget for the double-buffered activation blocks (in + out).  Kept well
# under the v7x physical 64 MiB; vmem_limit_bytes below raises the scoped cap
# on v5e (16 MiB default) so the same budget is valid on every generation.
_VMEM_ACT_BUDGET = 24 * 1024 * 1024
_VMEM_LIMIT_BYTES = 32 * 1024 * 1024
_TARGET_LANES = 32768


def _pick_pixel_tile(P, C, N):
    """Returns (tp, need_pad).

    tp is the pixel-tile (lane) size for the (bn, 2C, tp) activation blocks.
    need_pad=True means P is not 128-aligned AND too large for a single
    full-extent block under the VMEM budget, so the caller must pad P up to a
    128 multiple first.
    """
    bytes_per_lane = 2 * C * 4                      # one f32 column, 2C rows
    # in + out activation blocks, each double-buffered.
    cap_lanes = max(128, _VMEM_ACT_BUDGET // (bytes_per_lane * 2 * 2))

    if P % 128 != 0:
        # Non-128-aligned last dim: only a full-extent block is legal.
        if P <= cap_lanes:
            return P, False
        return None, True                           # caller pads P to 128k

    tp = min(_TARGET_LANES, cap_lanes, P)
    tp = (tp // 128) * 128
    while P % tp != 0:                              # largest 128-mult divisor
        tp -= 128

    # v7x megacore: with a single image make sure there are >= 2 blocks so
    # both TensorCores get work.
    if N == 1 and tp == P and P >= 256:
        half = (P // 2 // 128) * 128
        if half and P % half == 0:
            tp = half
    return tp, False


def _fused_freq_mlp(y_f, w1, w2):
    """y_f: (N, 2C, P) f32 packed [real; imag] spectrum; w1/w2: (2C, 2C).

    Returns o: (N, 2C, P) f32 packed [real; imag] output spectrum.
    """
    N, C2, P = y_f.shape
    C = C2 // 2

    tp, need_pad = _pick_pixel_tile(P, C, N)
    P_k = P
    if need_pad:
        # Rare guard path (very large, non-128-aligned H*Wr): pad so the block
        # can be tiled instead of compiling a VMEM-OOM full-extent block.
        P_k = ((P + 127) // 128) * 128
        y_f = jnp.pad(y_f, ((0, 0), (0, 0), (0, P_k - P)))
        tp, _ = _pick_pixel_tile(P_k, C, N)

    n_p = P_k // tp

    # Tiny-problem path: collapse the batch into one grid step to amortize the
    # ~0.35 us per-step overhead.  Skipped for production-size images.
    bn = N if (n_p == 1 and N * C2 * P_k * 4 <= (1 << 20)) else 1

    act_spec = pl.BlockSpec((bn, C2, tp), lambda n, p: (n, 0, p))
    w_spec = pl.BlockSpec((C2, C2), lambda n, p: (0, 0))

    o = pl.pallas_call(
        _fft_mlp_kernel,
        out_shape=jax.ShapeDtypeStruct((N, C2, P_k), jnp.float32),
        grid_spec=pltpu.PrefetchScalarGridSpec(
            num_scalar_prefetch=0,
            grid=(N // bn, n_p),
            in_specs=[act_spec, w_spec, w_spec],
            out_specs=act_spec,
        ),
        compiler_params=pltpu.CompilerParams(
            dimension_semantics=("parallel", "parallel"),
            vmem_limit_bytes=_VMEM_LIMIT_BYTES),
    )(y_f, w1, w2)

    if need_pad:
        o = o[:, :, :P]
    return o


def resblock_fft_bench(x, conv1_w, conv2_w, *, norm="backward"):
    """x: (N, C, H, W) float32 (NCHW, like the PyTorch module).
    conv*_w: (2C, 2C, 1, 1) -- nn.Conv2d weight layout (out_ch, in_ch, 1, 1)."""
    N, C, H, W = x.shape

    # TODO(synk): rfft2 / irfft2 have no Pallas TPU equivalent; kept in XLA.
    y = jnp.fft.rfft2(x, axes=(-2, -1), norm=norm)      # (N, C, H, Wr) complex64
    Wr = y.shape[-1]
    P = H * Wr

    # Single fused pass: real/imag extraction + channel concat -> (N, 2C, P).
    y_f = jnp.concatenate([jnp.real(y), jnp.imag(y)], axis=1).reshape(N, 2 * C, P)

    w1 = conv1_w[:, :, 0, 0].astype(jnp.float32)          # (2C, 2C)
    w2 = conv2_w[:, :, 0, 0].astype(jnp.float32)          # (2C, 2C)

    o = _fused_freq_mlp(y_f, w1, w2)                      # (N, 2C, P)
    o = o.reshape(N, 2 * C, H, Wr)
    o_real, o_imag = o[:, :C], o[:, C:]                   # cheap slices, fuse into complex()
    return jnp.fft.irfft2(jax.lax.complex(o_real, o_imag), s=(H, W),
                          axes=(-2, -1), norm=norm)


def _reference(x, conv1_w, conv2_w, norm="backward"):
    """Pure-JAX reference of the same forward pass (for sanity checking)."""
    N, C, H, W = x.shape
    y = jnp.fft.rfft2(x, axes=(-2, -1), norm=norm)
    y_f = jnp.concatenate([y.real, y.imag], axis=1)
    h = jnp.einsum("oc,nchw->nohw", conv1_w[:, :, 0, 0], y_f)
    h = jnp.maximum(h, 0.0)
    o = jnp.einsum("oc,nchw->nohw", conv2_w[:, :, 0, 0], h)
    y_real, y_imag = o[:, :C], o[:, C:]
    return jnp.fft.irfft2(jax.lax.complex(y_real, y_imag), s=(H, W),
                          axes=(-2, -1), norm=norm)


if __name__ == "__main__":
    key = jax.random.PRNGKey(0)
    k_x, k_w1, k_w2 = jax.random.split(key, 3)

    N, C, H, W = 2, 4, 16, 16
    x = jax.random.normal(k_x, (N, C, H, W), dtype=jnp.float32)

    # Deterministic synthetic Conv2d weights: (out_ch*2, in_ch*2, 1, 1), no bias.
    conv1_w = jax.random.normal(k_w1, (2 * C, 2 * C, 1, 1), dtype=jnp.float32) * 0.1
    conv2_w = jax.random.normal(k_w2, (2 * C, 2 * C, 1, 1), dtype=jnp.float32) * 0.1

    fwd = jax.jit(functools.partial(resblock_fft_bench, norm="backward"))
    out = fwd(x, conv1_w, conv2_w)
    jax.block_until_ready(out)

    ref = _reference(x, conv1_w, conv2_w)
    assert out.shape == (N, C, H, W), out.shape
    assert jnp.allclose(out, ref, atol=1e-4, rtol=1e-4), \
        float(jnp.max(jnp.abs(out - ref)))

    print("KERNEL_OK")
</pallas_src>

<mosaic_0001>
module attributes {stable_mosaic.version = 11 : i64} {
  func.func @_fft_mlp_kernel(%arg0: i32, %arg1: i32, %arg2: memref<2x8x144xf32, #tpu.memory_space<vmem>>, %arg3: memref<8x8xf32, #tpu.memory_space<vmem>>, %arg4: memref<8x8xf32, #tpu.memory_space<vmem>>, %arg5: memref<2x8x144xf32, #tpu.memory_space<vmem>>) attributes {dimension_semantics = [#tpu.dimension_semantics<parallel>, #tpu.dimension_semantics<parallel>], iteration_bounds = array<i64: 1, 1>, scalar_prefetch = 0 : i64, scratch_operands = 0 : i64, tpu.core_type = #tpu.core_type<tc>, window_params = [{transform_indices = @transform_0, window_bounds = array<i64: 2, 8, 144>}, {pipeline_mode = #tpu.pipeline_mode<synchronous>, transform_indices = @transform_1, window_bounds = array<i64: 8, 8>}, {pipeline_mode = #tpu.pipeline_mode<synchronous>, transform_indices = @transform_2, window_bounds = array<i64: 8, 8>}, {transform_indices = @transform_3, window_bounds = array<i64: 2, 8, 144>}]} {
    %c0 = arith.constant 0 : index
    %c0_0 = arith.constant 0 : index
    %0 = vector.load %arg3[%c0, %c0_0] : memref<8x8xf32, #tpu.memory_space<vmem>>, vector<8x8xf32>
    %c0_1 = arith.constant 0 : index
    %c0_2 = arith.constant 0 : index
    %1 = vector.load %arg4[%c0_1, %c0_2] : memref<8x8xf32, #tpu.memory_space<vmem>>, vector<8x8xf32>
    %c0_3 = arith.constant 0 : index
    %c0_4 = arith.constant 0 : index
    %c0_5 = arith.constant 0 : index
    %2 = vector.load %arg2[%c0_3, %c0_4, %c0_5] : memref<2x8x144xf32, #tpu.memory_space<vmem>>, vector<1x8x144xf32>
    %3 = vector.shape_cast %2 : vector<1x8x144xf32> to vector<8x144xf32>
    %cst = arith.constant dense<0.000000e+00> : vector<8x144xf32>
    %4 = tpu.matmul %0, %3, %cst {dimension_numbers = #tpu.dot_dimension_numbers<[1], [0], [0], [1], [0, 0, 1, 1], [], []>} : vector<8x8xf32>, vector<8x144xf32>, vector<8x144xf32> -> vector<8x144xf32>
    %cst_6 = arith.constant 0.000000e+00 : f32
    %5 = vector.broadcast %cst_6 : f32 to vector<8x144xf32>
    %6 = arith.maximumf %4, %5 : vector<8x144xf32>
    %cst_7 = arith.constant dense<0.000000e+00> : vector<8x144xf32>
    %7 = tpu.matmul %1, %6, %cst_7 {dimension_numbers = #tpu.dot_dimension_numbers<[1], [0], [0], [1], [0, 0, 1, 1], [], []>} : vector<8x8xf32>, vector<8x144xf32>, vector<8x144xf32> -> vector<8x144xf32>
    %c0_8 = arith.constant 0 : index
    %c0_9 = arith.constant 0 : index
    %c0_10 = arith.constant 0 : index
    %8 = vector.load %arg5[%c0_8, %c0_9, %c0_10] : memref<2x8x144xf32, #tpu.memory_space<vmem>>, vector<1x8x144xf32>
    %9 = vector.shape_cast %8 : vector<1x8x144xf32> to vector<8x144xf32>
    %10 = vector.shape_cast %7 : vector<8x144xf32> to vector<1x8x144xf32>
    tpu.vector_store %arg5[%c0_8, %c0_9, %c0_10], %10 {strides = array<i32>} : memref<2x8x144xf32, #tpu.memory_space<vmem>>, vector<1x8x144xf32>,
    %c1 = arith.constant 1 : index
    %c0_11 = arith.constant 0 : index
    %c0_12 = arith.constant 0 : index
    %11 = vector.load %arg2[%c1, %c0_11, %c0_12] : memref<2x8x144xf32, #tpu.memory_space<vmem>>, vector<1x8x144xf32>
    %12 = vector.shape_cast %11 : vector<1x8x144xf32> to vector<8x144xf32>
    %cst_13 = arith.constant dense<0.000000e+00> : vector<8x144xf32>
    %13 = tpu.matmul %0, %12, %cst_13 {dimension_numbers = #tpu.dot_dimension_numbers<[1], [0], [0], [1], [0, 0, 1, 1], [], []>} : vector<8x8xf32>, vector<8x144xf32>, vector<8x144xf32> -> vector<8x144xf32>
    %cst_14 = arith.constant 0.000000e+00 : f32
    %14 = vector.broadcast %cst_14 : f32 to vector<8x144xf32>
    %15 = arith.maximumf %13, %14 : vector<8x144xf32>
    %cst_15 = arith.constant dense<0.000000e+00> : vector<8x144xf32>
    %16 = tpu.matmul %1, %15, %cst_15 {dimension_numbers = #tpu.dot_dimension_numbers<[1], [0], [0], [1], [0, 0, 1, 1], [], []>} : vector<8x8xf32>, vector<8x144xf32>, vector<8x144xf32> -> vector<8x144xf32>
    %c1_16 = arith.constant 1 : index
    %c0_17 = arith.constant 0 : index
    %c0_18 = arith.constant 0 : index
    %17 = vector.load %arg5[%c1_16, %c0_17, %c0_18] : memref<2x8x144xf32, #tpu.memory_space<vmem>>, vector<1x8x144xf32>
    %18 = vector.shape_cast %17 : vector<1x8x144xf32> to vector<8x144xf32>
    %19 = vector.shape_cast %16 : vector<8x144xf32> to vector<1x8x144xf32>
    tpu.vector_store %arg5[%c1_16, %c0_17, %c0_18], %19 {strides = array<i32>} : memref<2x8x144xf32, #tpu.memory_space<vmem>>, vector<1x8x144xf32>,
    return
  }
  func.func @transform_0(%arg0: i32, %arg1: i32) -> (i32, i32, i32) {
    %c0_i32 = arith.constant 0 : i32
    %c0_i32_0 = arith.constant 0 : i32
    return %arg0, %c0_i32, %arg1 : i32, i32, i32
  }
  func.func @transform_1(%arg0: i32, %arg1: i32) -> (i32, i32) {
    %c0_i32 = arith.constant 0 : i32
    %c0_i32_0 = arith.constant 0 : i32
    %c0_i32_1 = arith.constant 0 : i32
    return %c0_i32, %c0_i32_0 : i32, i32
  }
  func.func @transform_2(%arg0: i32, %arg1: i32) -> (i32, i32) {
    %c0_i32 = arith.constant 0 : i32
    %c0_i32_0 = arith.constant 0 : i32
    %c0_i32_1 = arith.constant 0 : i32
    return %c0_i32, %c0_i32_0 : i32, i32
  }
  func.func @transform_3(%arg0: i32, %arg1: i32) -> (i32, i32, i32) {
    %c0_i32 = arith.constant 0 : i32
    %c0_i32_0 = arith.constant 0 : i32
    return %arg0, %c0_i32, %arg1 : i32, i32, i32
  }
}

</mosaic_0001>

<bundles_post_ra>
// kernel: reverse.1
= control target key start
LH: loop header
LB: loop body
LE: loop exit
PB: predicated region body
PF: predicated region fallthrough
CT: control target
= control target key end

     0   :  { %v71_v3 = vlaneseq  ;;  %v64_v9 = vld [vmem:[#allocation0 + $0x7] ss:$-1 sm:$0xff]  ;;  %v78_v12 = vld [vmem:[#allocation0 + $0x17] ss:$-1 sm:$0xff]  ;;  %s329_s0 = inlined_call_operand.vmem [shape: f32[2,4,16,7], index: 0, kind: input, shape index: {}]   ;;  %s330_s1 = inlined_call_operand.vmem [shape: f32[2,4,16,7], index: 1, kind: output, shape index: {}]  }
   0x1   :  { %v44_v0 = vld [vmem:[%s329_s0] sm:$0xff]  ;;  %v46_v1 = vld [vmem:[%s329_s0 + $0x8] sm:$0xff]  ;;  %v48_v2 = vld [vmem:[%s329_s0 + $0x10] sm:$0xff]  ;;  %v65_v10 = vrot.slane %v64_v9, 1  ;;  %v79_v14 = vrot.slane %v78_v12, 1 }
   0x2   :  { %45 = vst [vmem:[#allocation0 + $0x8] sm:$0xff] %v44_v0  ;;  %47 = vst [vmem:[#allocation0 + $0x18] sm:$0xff] %v46_v1  ;;  %v50_v4 = vld [vmem:[%s329_s0 + $0x18] sm:$0xff]  ;;  %v52_v5 = vld [vmem:[%s329_s0 + $0x20] sm:$0xff]  ;;  %v72_v11 = vshrl.u32 %v71_v3, 7 }
   0x3   :  { %49 = vst [vmem:[#allocation0 + $0x28] sm:$0xff] %v48_v2  ;;  %v54_v6 = vld [vmem:[%s329_s0 + $0x28] sm:$0xff]  ;;  %51 = vst [vmem:[#allocation0 + $0x38] sm:$0xff] %v50_v4  ;;  %v56_v7 = vld [vmem:[%s329_s0 + $0x30] sm:$0xff] }
   0x4   :  { %53 = vst [vmem:[#allocation0 + $0x48] sm:$0xff] %v52_v5  ;;  %55 = vst [vmem:[#allocation0 + $0x58] sm:$0xff] %v54_v6  ;;  %v58_v8 = vld [vmem:[%s329_s0 + $0x38] sm:$0xff]  ;;  %v92_v13 = vld [vmem:[#allocation0 + $0x27] ss:$-1 sm:$0xff]  ;;  %vm73_vm0 = vcmp.lt.s32.totalorder %v72_v11, 7 }
   0x5   :  { %57 = vst [vmem:[#allocation0 + $0x68] sm:$0xff] %v56_v7  ;;  %59 = vst [vmem:[#allocation0 + $0x78] sm:$0xff] %v58_v8  ;;  %v93_v15 = vrot.slane %v92_v13, 1  ;;  %v106_v16 = vld [vmem:[#allocation0 + $0x37] ss:$-1 sm:$0xff] }
   0x6   :  { %66 = vst [vmem:[#allocation1] sm:$0xff] %v65_v10  ;;  %v107_v17 = vrot.slane %v106_v16, 1  ;;  %v120_v18 = vld [vmem:[#allocation0 + $0x47] ss:$-1 sm:$0xff]  ;;  %v134_v19 = vld [vmem:[#allocation0 + $0x57] ss:$-1 sm:$0xff] }
   0x7   :  { %80 = vst [vmem:[#allocation1 + $0x8] sm:$0xff] %v79_v14  ;;  %94 = vst [vmem:[#allocation1 + $0x10] sm:$0xff] %v93_v15  ;;  %v121_v20 = vrot.slane %v120_v18, 1  ;;  %v135_v21 = vrot.slane %v134_v19, 1  ;;  %v148_v22 = vld [vmem:[#allocation0 + $0x67] ss:$-1 sm:$0xff] }
   0x8   :  { %v162_v23 = vld [vmem:[#allocation0 + $0x77] ss:$-1 sm:$0xff]  ;;  %108 = vst [vmem:[#allocation1 + $0x18] sm:$0xff] %v107_v17  ;;  %v149_v24 = vrot.slane %v148_v22, 1 }
   0x9   :  { %v163_v25 = vrot.slane %v162_v23, 1  ;;  %v69_v26 = vld [vmem:[#allocation0 + $0xf] ss:$-1 sm:$0xff]  ;;  %v83_v27 = vld [vmem:[#allocation0 + $0x1f] ss:$-1 sm:$0xff]  ;;  %122 = vst [vmem:[#allocation1 + $0x20] sm:$0xff] %v121_v20 }
   0xa   :  { %v97_v28 = vld [vmem:[#allocation0 + $0x2f] ss:$-1 sm:$0xff]  ;;  %136 = vst [vmem:[#allocation1 + $0x28] sm:$0xff] %v135_v21  ;;  %v70_v29 = vrot.slane %v69_v26, 1  ;;  %v84_v30 = vrot.slane %v83_v27, 1  ;;  %150 = vst [vmem:[#allocation1 + $0x30] sm:$0xff] %v149_v24 }
   0xb   :  { %v98_v31 = vrot.slane %v97_v28, 1  ;;  %v111_v32 = vld [vmem:[#allocation0 + $0x3f] ss:$-1 sm:$0xff]  ;;  %164 = vst [vmem:[#allocation1 + $0x38] sm:$0xff] %v163_v25  ;;  %v125_v34 = vld [vmem:[#allocation0 + $0x4f] ss:$-1 sm:$0xff] }
   0xc   :  { %v112_v33 = vrot.slane %v111_v32, 1  ;;  %v139_v35 = vld [vmem:[#allocation0 + $0x5f] ss:$-1 sm:$0xff]  ;;  %74 = vst.msk [vmem:[#allocation1] sm:$0xff] %vm73_vm0, %v70_v29  ;;  %88 = vst.msk [vmem:[#allocation1 + $0x8] sm:$0xff] %vm73_vm0, %v84_v30  ;;  %v126_v36 = vrot.slane %v125_v34, 1 }
   0xd   :  { %102 = vst.msk [vmem:[#allocation1 + $0x10] sm:$0xff] %vm73_vm0, %v98_v31  ;;  %v140_v37 = vrot.slane %v139_v35, 1  ;;  %v153_v38 = vld [vmem:[#allocation0 + $0x6f] ss:$-1 sm:$0xff]  ;;  %v167_v39 = vld [vmem:[#allocation0 + $0x7f] ss:$-1 sm:$0xff] }
   0xe   :  { %116 = vst.msk [vmem:[#allocation1 + $0x18] sm:$0xff] %vm73_vm0, %v112_v33  ;;  %v154_v40 = vrot.slane %v153_v38, 1  ;;  %v168_v41 = vrot.slane %v167_v39, 1  ;;  %130 = vst.msk [vmem:[#allocation1 + $0x20] sm:$0xff] %vm73_vm0, %v126_v36 }
   0xf   :  { %144 = vst.msk [vmem:[#allocation1 + $0x28] sm:$0xff] %vm73_vm0, %v140_v37 }
  0x10   :  { %158 = vst.msk [vmem:[#allocation1 + $0x30] sm:$0xff] %vm73_vm0, %v154_v40  ;;  %172 = vst.msk [vmem:[#allocation1 + $0x38] sm:$0xff] %vm73_vm0, %v168_v41 }
  0x13   :  { %v214_v42 = vld [vmem:[#allocation1] sm:$0xff]  ;;  %v216_v43 = vld [vmem:[#allocation1 + $0x8] sm:$0xff] }
  0x14   :  { %v218_v44 = vld [vmem:[#allocation1 + $0x10] sm:$0xff]  ;;  %215 = vst [vmem:[%s330_s1] sm:$0xff] %v214_v42  ;;  %217 = vst [vmem:[%s330_s1 + $0x8] sm:$0xff] %v216_v43 }
  0x15   :  { %219 = vst [vmem:[%s330_s1 + $0x10] sm:$0xff] %v218_v44  ;;  %v220_v45 = vld [vmem:[#allocation1 + $0x18] sm:$0xff]  ;;  %v222_v46 = vld [vmem:[#allocation1 + $0x20] sm:$0xff] }
  0x16   :  { %221 = vst [vmem:[%s330_s1 + $0x18] sm:$0xff] %v220_v45  ;;  %v224_v47 = vld [vmem:[#allocation1 + $0x28] sm:$0xff]  ;;  %223 = vst [vmem:[%s330_s1 + $0x20] sm:$0xff] %v222_v46 }
  0x17   :  { %225 = vst [vmem:[%s330_s1 + $0x28] sm:$0xff] %v224_v47  ;;  %v226_v48 = vld [vmem:[#allocation1 + $0x30] sm:$0xff]  ;;  %v228_v49 = vld [vmem:[#allocation1 + $0x38] sm:$0xff] }
  0x18   :  { %227 = vst [vmem:[%s330_s1 + $0x30] sm:$0xff] %v226_v48  ;;  %229 = vst [vmem:[%s330_s1 + $0x38] sm:$0xff] %v228_v49 }

// kernel: resblock_fft_bench.1
= control target key start
LH: loop header
LB: loop body
LE: loop exit
PB: predicated region body
PF: predicated region fallthrough
CT: control target
= control target key end

     0   :  { %v335_v2 = vmov 0.0   ;;  %vm18_vm0 = vcmask 64512   ;;  %vm170_vm1 = vcmask 130048   ;;  %s390_s0 = inlined_call_operand.vmem [shape: f32[2,8,144], index: 0, kind: input, shape index: {}]   ;;  %s391_s1 = inlined_call_operand.vmem [shape: f32[8,8], index: 1, kind: input, shape index: {}]   ;;  %s392_s2 = inlined_call_operand.vmem [shape: f32[8,8], index: 2, kind: input, shape index: {}]   ;;  %s393_s3 = inlined_call_operand.vmem [shape: f32[2,8,144], index: 3, kind: output, shape index: {}]  }
   0x1   :  { %v17_v0 = vld [vmem:[%s390_s0 + $0x8] sm:$0xff]  ;;  %v16_v1 = vld [vmem:[%s390_s0] sm:$0xff]  ;;  %86 = vmatprep.mubr.f32.mxu0 %v335_v2  ;;  %162 = vmatprep.mubr.f32.mxu1 %v335_v2  ;;  %v329_v4 = vld [vmem:[%s390_s0 + $0x18] sm:$0xff] }
   0x2   :  { %v14_v3 = vld [vmem:[%s391_s1] sm:$0xff]  ;;  %22 = vmatprep.subr.mxu0 %v17_v0  ;;  %v328_v5 = vld [vmem:[%s390_s0 + $0x10] sm:$0xff] }
   0x3   :  { %23 = vmatpush1.msra.mxu0 %v16_v1  ;;  %v15_v10 = vld [vmem:[%s392_s2] sm:$0xff] }
   0x4   :  { %326 = vmatmul.mubr.msk.f32.vlgmr.msra.gmra.mrb[0].mxu0 %vm18_vm0, %v14_v3  ;;  %175 = vmatprep.subr.mxu0 %v329_v4 }
   0x5   :  { %176 = vmatpush1.msra.mxu0 %v328_v5  ;;  %239 = vmatprep.mubr.f32.mxu0 %v335_v2 }
   0x8   :  { %330 = vmatmul.mubr.msk.f32.vlgmr.msra.gmra.mrb[2].mxu0 %vm18_vm0, %v14_v3 }
  0xd7   :  { %v88_v6 = vpop.f32.mrb[0].mxu0 }
  0xd8   :  { %v90_v7 = vpop.f32.mrb[1].mxu0  ;;  %v93_v9 = vmax.f32 %v88_v6, 0.0 }
  0xd9   :  { %v94_v8 = vmax.f32 %v90_v7, 0.0 }
  0xdb   :  { %98 = vmatprep.subr.mxu1 %v94_v8  ;;  %v241_v11 = vpop.f32.mrb[2].mxu0 }
  0xdc   :  { %99 = vmatpush1.msra.mxu1 %v93_v9  ;;  %v243_v12 = vpop.f32.mrb[3].mxu0  ;;  %v246_v14 = vmax.f32 %v241_v11, 0.0 }
  0xdd   :  { %v247_v13 = vmax.f32 %v243_v12, 0.0  ;;  %327 = vmatmul.mubr.msk.f32.vlgmr.msra.gmra.mrb[0].mxu1 %vm18_vm0, %v15_v10 }
  0xde   :  { %312 = vmatprep.mubr.f32.mxu1 %v335_v2 }
  0xdf   :  { %248 = vmatprep.subr.mxu1 %v247_v13 }
  0xe0   :  { %249 = vmatpush1.msra.mxu1 %v246_v14 }
  0xe1   :  { %331 = vmatmul.mubr.msk.f32.vlgmr.msra.gmra.mrb[2].mxu1 %vm18_vm0, %v15_v10 }
 0x1b0   :  { %v164_v15 = vpop.f32.mrb[0].mxu1 }
 0x1b1   :  { %169 = vst [vmem:[%s393_s3] sm:$0xff] %v164_v15  ;;  %v166_v16 = vpop.f32.mrb[1].mxu1 }
 0x1b2   :  { %171 = vst.msk [vmem:[%s393_s3 + $0x8] sm:$0xff] %vm170_vm1, %v166_v16 }
 0x1b4   :  { %v314_v17 = vpop.f32.mrb[2].mxu1 }
 0x1b5   :  { %332 = vst [vmem:[%s393_s3 + $0x10] sm:$0xff] %v314_v17  ;;  %v316_v18 = vpop.f32.mrb[3].mxu1 }
 0x1b6   :  { %333 = vst.msk [vmem:[%s393_s3 + $0x18] sm:$0xff] %vm170_vm1, %v316_v18 }

</bundles_post_ra>
